<compile_context>
chip_gen: v7x
topology: tpu7x:2x2x1
jax: 0.10.0
libtpu: 0.0.40
codegen_flags: <defaults>
</compile_context>

<pallas_src>
import logging
from abc import ABC, abstractmethod
from typing import Any, Dict

import jax
import jax.numpy as jnp
from jax.experimental import pallas as pl
from jax.experimental.pallas import tpu as pltpu

_SMALL_TENSOR_BYPASS_BYTES = 256 * 1024  # launch overhead dominates below this


# ----------------------------------------------------------------------------
# Pallas kernel: direct HBM->HBM DMA copy (optional path of `to_device`).
# ----------------------------------------------------------------------------
def _dma_copy_kernel(x_hbm_ref, o_hbm_ref, sem):
    # Single descriptor, no VMEM staging, no vreg traffic, no grid.
    cp = pltpu.make_async_copy(x_hbm_ref, o_hbm_ref, sem)
    cp.start()
    cp.wait()


def materialized_copy_pallas(x: jax.Array) -> jax.Array:
    """Explicit fresh-buffer copy of a tensor via a raw HBM->HBM DMA.

    Both operands live in `pl.ANY` (left in place, i.e. HBM); the kernel body
    issues one async copy and waits on its semaphore.  Works for any shape
    and dtype — there is no VMEM tiling, so no (8,128) or divisibility
    constraints and no scoped-VMEM budget to manage on any TPU generation.
    """
    if x.size == 0:
        return jnp.copy(x)  # nothing to DMA

    nbytes = int(x.size) * jnp.dtype(x.dtype).itemsize
    return pl.pallas_call(
        _dma_copy_kernel,
        out_shape=jax.ShapeDtypeStruct(x.shape, x.dtype),
        in_specs=[pl.BlockSpec(memory_space=pl.ANY)],
        out_specs=pl.BlockSpec(memory_space=pl.ANY),
        scratch_shapes=[pltpu.SemaphoreType.DMA(())],
        cost_estimate=pl.CostEstimate(
            flops=0, transcendentals=0, bytes_accessed=2 * nbytes
        ),
    )(x)


# ----------------------------------------------------------------------------
# JAX mirror of the PyTorch OniModule base class (glue only; no params).
# ----------------------------------------------------------------------------
class OniModule(ABC):
    """Base class for all Oni modules (JAX/Pallas port)."""

    def __init__(self, config: Dict[str, Any]):
        self.config = config
        # 'device' config key kept for parity; default TPU backend device used.
        self.device = config.get("device", "tpu")
        self._jax_device = jax.devices()[0]
        self._setup_logging()

    def _setup_logging(self):
        self.logger = logging.getLogger(f"oni.{self.__class__.__name__}")

    @abstractmethod
    def forward(self, *args, **kwargs):
        """Forward pass - must be implemented by subclasses."""
        raise NotImplementedError

    def safe_forward(self, *args, **kwargs):
        """Safe forward pass with error handling."""
        try:
            return self.forward(*args, **kwargs)
        except Exception as e:  # noqa: BLE001 - mirrors the PyTorch semantics
            self.logger.error(
                f"Error in {self.__class__.__name__}.forward: {e}"
            )
            return self._get_fallback_output(*args, **kwargs)

    def _get_fallback_output(self, *args, **kwargs):
        """Fallback output when forward pass fails."""
        return None

    def to_device(self, tensor: jax.Array, materialize: bool = False) -> jax.Array:
        """Move tensor to module device.

        Faithful equivalent of `tensor.to(device)`: placement only, no copy
        kernel (zero HBM traffic).  Set `materialize=True` to force a fresh
        buffer; small tensors bypass the kernel (launch overhead dominates),
        large tensors go through the HBM->HBM DMA Pallas kernel.
        """
        if materialize:
            nbytes = int(tensor.size) * jnp.dtype(tensor.dtype).itemsize
            if nbytes < _SMALL_TENSOR_BYPASS_BYTES:
                return jnp.copy(jax.device_put(tensor, self._jax_device))
            return materialized_copy_pallas(tensor)
        return jax.device_put(tensor, self._jax_device)


# Minimal concrete subclass purely so the abstract base can be exercised:
# its forward is just the base class's only tensor op (`to_device`).
class _IdentityOni(OniModule):
    def forward(self, x: jax.Array) -> jax.Array:
        return self.to_device(x)


if __name__ == "__main__":
    key = jax.random.PRNGKey(0)
    # Small NCHW input consistent with a conv-style Oni subclass.
    x = jax.random.normal(key, (2, 4, 16, 16), dtype=jnp.float32)

    module = _IdentityOni({"device": "tpu"})

    # Default (fast) path: placement only, no Pallas kernel, no HBM copy.
    out = module.safe_forward(x)
    out = jax.block_until_ready(out)
    assert out.shape == x.shape and out.dtype == x.dtype
    assert bool(jnp.allclose(out, x)), "to_device placement mismatch"

    # Exercise the Pallas HBM->HBM DMA copy kernel once directly.
    out_copy = jax.block_until_ready(materialized_copy_pallas(x))
    assert out_copy.shape == x.shape and out_copy.dtype == x.dtype
    assert bool(jnp.allclose(out_copy, x)), "pallas DMA copy mismatch"

    # Materialize path through the module (small tensor -> bypass, still correct).
    out_mat = jax.block_until_ready(module.to_device(x, materialize=True))
    assert bool(jnp.allclose(out_mat, x)), "materialize path mismatch"

    # Also check the fallback path of safe_forward (error -> None), glue only.
    assert module.safe_forward() is None

    print("KERNEL_OK")
</pallas_src>

<mosaic_0001>
module attributes {stable_mosaic.version = 11 : i64} {
  func.func @_dma_copy_kernel(%arg0: memref<2x4x16x16xf32, #tpu.memory_space<any>>, %arg1: memref<2x4x16x16xf32, #tpu.memory_space<any>>, %arg2: memref<!tpu.dma_semaphore, #tpu.memory_space<semaphore_mem>>) attributes {dimension_semantics = [], scalar_prefetch = 0 : i64, scratch_operands = 1 : i64, tpu.core_type = #tpu.core_type<tc>} {
    tpu.enqueue_dma source(%arg0 : memref<2x4x16x16xf32, #tpu.memory_space<any>>) target(%arg1 : memref<2x4x16x16xf32, #tpu.memory_space<any>>) target_semaphore(%arg2 : memref<!tpu.dma_semaphore, #tpu.memory_space<semaphore_mem>>)
    tpu.wait_dma2 semaphore(%arg2 : memref<!tpu.dma_semaphore, #tpu.memory_space<semaphore_mem>>) src(%arg0 : memref<2x4x16x16xf32, #tpu.memory_space<any>>) dst(%arg1 : memref<2x4x16x16xf32, #tpu.memory_space<any>>)
    return
  }
}

</mosaic_0001>

<bundles_post_ra>
// kernel: tpu_custom_call.1
= control target key start
LH: loop header
LB: loop body
LE: loop exit
PB: predicated region body
PF: predicated region fallthrough
CT: control target
= control target key end

     0   :  { %s36_s6 = smov [#allocation2]   ;;  %s37_s7 = smov [#allocation3]   ;;  %s55_s0 = inlined_call_operand.hbm [shape: f32[2,4,16,16], index: 0, kind: input, shape index: {}]   ;;  %s56_s1 = inlined_call_operand.hbm [shape: f32[2,4,16,16], index: 1, kind: output, shape index: {}]  }
   0x1   :  { %s38_s8 = smov 0  }
   0x2   :  { %18 = dma.general %s55_s0, 2048, %s56_s1, %s36_s6, %s37_s7, [#allocation4], %s38_s8, 0  }
   0x3   :  { %34 = dma.done.wait [#allocation2], 2048 }
   0x4   :  { %35 = vsyncadd [#allocation2], 4294965248 }
   0x5   :  { %24 = vsyncmov [#allocation2] }
   0x8   :  { %s25_s13 = vpop.sfrf %24 }
   0x9   :  { %p30_p0 = scmp.ne.s32.totalorder %s25_s13, 0 }
   0xb   :  { %29 = shalt.err (%p30_p0)  }

</bundles_post_ra>
